<compile_context>
chip_gen: v7x
topology: tpu7x:2x2x1
jax: 0.10.0
libtpu: 0.0.40
codegen_flags: <defaults>
</compile_context>

<pallas_src>
import functools

import jax
import jax.numpy as jnp
from jax.experimental import pallas as pl
from jax.experimental.pallas import tpu as pltpu


# ----------------------------------------------------------------------------
# helpers
# ----------------------------------------------------------------------------

def _round_up(v, m):
    return ((v + m - 1) // m) * m


def _choose_m_tile(m, max_tile=1024):
    """(tile_m, M_pad): a single full tile when small, else a 128-multiple tile."""
    if m <= max_tile:
        t = _round_up(m, 8)
        return t, t
    return max_tile, _round_up(m, max_tile)


# ----------------------------------------------------------------------------
# Pallas kernels
# ----------------------------------------------------------------------------

def _linear_kernel(x_ref, w_ref, b_ref, o_ref, *, activation):
    # bf16 operands, f32 accumulation on the MXU; N is padded to 128 so the
    # output stores are full-lane vst.
    acc = jnp.dot(x_ref[...], w_ref[...], preferred_element_type=jnp.float32)
    acc = acc + b_ref[...]
    if activation == "relu":
        acc = jnp.maximum(acc, 0.0)
    o_ref[...] = acc.astype(o_ref.dtype)


def pallas_linear(x, w, b, activation="none", tile_m=1024):
    """y = act(x @ w + b). x:[M,K] w:[K,N] b:[N] -> [M,N] f32. M tiled on the grid."""
    M, Kd = x.shape
    N = w.shape[1]
    N_pad = _round_up(N, 128)
    tm = min(_round_up(tile_m, 8), _round_up(M, 8))
    M_pad = _round_up(M, tm)
    x_p = jnp.pad(x.astype(jnp.bfloat16), ((0, M_pad - M), (0, 0)))
    w_p = jnp.pad(w.astype(jnp.bfloat16), ((0, 0), (0, N_pad - N)))
    b_p = jnp.pad(b.astype(jnp.float32), ((0, N_pad - N),)).reshape(1, N_pad)
    out = pl.pallas_call(
        functools.partial(_linear_kernel, activation=activation),
        out_shape=jax.ShapeDtypeStruct((M_pad, N_pad), jnp.float32),
        grid=(M_pad // tm,),
        in_specs=[
            pl.BlockSpec((tm, Kd), lambda i: (i, 0)),
            pl.BlockSpec((Kd, N_pad), lambda i: (0, 0)),
            pl.BlockSpec((1, N_pad), lambda i: (0, 0)),
        ],
        out_specs=pl.BlockSpec((tm, N_pad), lambda i: (i, 0)),
        compiler_params=pltpu.CompilerParams(dimension_semantics=("parallel",)),
    )(x_p, w_p, b_p)
    return out[:M, :N]


def _masked_pool_kernel(f_ref, m_ref, o_ref):
    # f: [HW, C] bf16 (feature resolution), m: [nm, HW] bf16 (adjoint masks).
    o_ref[0] = jnp.dot(m_ref[0], f_ref[0], preferred_element_type=jnp.float32)


def masked_pool_batched(feats_rows, masks_adj):
    """Batched masked pooling at FEATURE resolution.

    feats_rows [G, HW, C], masks_adj [G, nm, HW] -> weighted sums [G, nm, C].
    The division by (sum of the original mask + 1e-5) is done by the caller.
    """
    # TODO(synk): HW here is the (small) feature resolution; if it ever becomes
    # large, add an inner 'arbitrary' grid axis over HW chunks with a resident
    # accumulator.
    G, HW, C = feats_rows.shape
    nm = masks_adj.shape[1]
    return pl.pallas_call(
        _masked_pool_kernel,
        out_shape=jax.ShapeDtypeStruct((G, nm, C), jnp.float32),
        grid=(G,),
        in_specs=[
            pl.BlockSpec((1, HW, C), lambda g: (g, 0, 0)),
            pl.BlockSpec((1, nm, HW), lambda g: (g, 0, 0)),
        ],
        out_specs=pl.BlockSpec((1, nm, C), lambda g: (g, 0, 0)),
        compiler_params=pltpu.CompilerParams(dimension_semantics=("parallel",)),
    )(feats_rows.astype(jnp.bfloat16), masks_adj.astype(jnp.bfloat16))


def _cosine_decoder_kernel(x_ref, p_ref, inv_ref, wp_ref, b_ref, dist_ref, sig_ref,
                           *, ncls, K, ncls_dec, scale, sigma_min, sigma_scale):
    # Fused calDist (cosine max over K prototypes, all classes at once) +
    # prototype selection + decoder head.  x is raw (un-normalized) bf16; the
    # argmax over K is invariant to 1/||x||, so rsqrt(||x||^2) (precomputed in
    # the wrapper) scales only the [1, tm] max.
    x = x_ref[0]                     # [tm, C] bf16
    p = p_ref[0]                     # [ncls*K + 1, C] bf16 (norm. protos + w_dec)
    inv = inv_ref[0]                 # [1, tm]  f32  (1 / max(||x||, eps))
    wpk = wp_ref[0]                  # [K, ncls_dec] f32  (raw proto . w_dec)
    bias = b_ref[...]                # [1, 1] f32

    # One MXU matmul produces all class scores AND q.w_dec, all lane-dense [*, tm].
    s_all = jnp.einsum("rc,mc->rm", p, x, preferred_element_type=jnp.float32)
    qw = s_all[ncls * K:ncls * K + 1]                          # [1, tm]

    for c in range(ncls):
        sc = s_all[c * K:(c + 1) * K]                          # [K, tm]
        mc = jnp.max(sc, axis=0, keepdims=True)                # [1, tm]
        dist_ref[0, c:c + 1, :] = mc * inv * scale
        if c < ncls_dec:
            ids = jax.lax.broadcasted_iota(jnp.int32, sc.shape, 0)
            idxc = jnp.min(jnp.where(sc >= mc, ids, jnp.int32(10 ** 9)),
                           axis=0, keepdims=True)              # first-max index
            onehot = (ids == idxc).astype(jnp.float32)         # [K, tm]
            sel_dot = jnp.sum(onehot * wpk[:, c:c + 1], axis=0, keepdims=True)
            z = qw - sel_dot + bias
            # stable softplus (log1p equivalent up to negligible f32 rounding)
            sp = jnp.maximum(z, 0.0) + jnp.log(1.0 + jnp.exp(-jnp.abs(z)))
            sig_ref[0, c:c + 1, :] = sigma_min + sigma_scale * sp


def cosine_decoder_batched(q_rows, protos_all, w_dec, b_dec, ncls_dec=2,
                           scaler=20.0, sigma_min=0.1, sigma_scale=1.0,
                           max_tile=1024):
    """Fused calDist + decoder.

    q_rows [B, M, C], protos_all [B, ncls, K, C] -> (dist [B,ncls,M], sigma [B,ncls_dec,M])
    TODO(synk): Decoder source not provided; implemented as a linear head on
    (q - selected_proto) + softplus with sigma_min/sigma_scale as constructed.
    TODO(synk): ncls_dec=2 implements 'bg + first fg way' as in the reference loop.
    """
    B, M, C = q_rows.shape
    ncls, K = protos_all.shape[1], protos_all.shape[2]
    tm, M_pad = _choose_m_tile(M, max_tile)

    q_f32 = q_rows.astype(jnp.float32)
    inv = jax.lax.rsqrt(jnp.maximum(jnp.sum(q_f32 * q_f32, axis=-1), 1e-16))  # [B, M]
    inv = jnp.pad(inv, ((0, 0), (0, M_pad - M))).reshape(B, 1, M_pad)
    x_p = jnp.pad(q_rows.astype(jnp.bfloat16), ((0, 0), (0, M_pad - M), (0, 0)))

    # hoisted prototype normalization (f32, eps=1e-8) + stacked decoder weight row
    pn = protos_all.astype(jnp.float32)
    pn = pn / jnp.maximum(jnp.sqrt(jnp.sum(pn * pn, axis=-1, keepdims=True)), 1e-8)
    w_vec = w_dec.reshape(-1).astype(jnp.float32)                         # [C]
    w_row = jnp.broadcast_to(w_vec.reshape(1, 1, C), (B, 1, C))
    p_stack = jnp.concatenate([pn.reshape(B, ncls * K, C), w_row],
                              axis=1).astype(jnp.bfloat16)                # [B, R, C]

    # decoder uses the RAW (un-normalized) prototypes: wp[b,c,k] = P[b,c,k].w_dec
    wp = jnp.einsum("bckd,d->bck",
                    protos_all[:, :ncls_dec].astype(jnp.float32), w_vec)  # [B,2,K]
    wp_t = wp.transpose(0, 2, 1)                                          # [B,K,2]
    b_arr = b_dec.reshape(1, 1).astype(jnp.float32)

    R = ncls * K + 1
    dist, sig = pl.pallas_call(
        functools.partial(_cosine_decoder_kernel, ncls=ncls, K=K, ncls_dec=ncls_dec,
                          scale=scaler, sigma_min=sigma_min, sigma_scale=sigma_scale),
        out_shape=(jax.ShapeDtypeStruct((B, ncls, M_pad), jnp.float32),
                   jax.ShapeDtypeStruct((B, ncls_dec, M_pad), jnp.float32)),
        grid=(B, M_pad // tm),
        in_specs=[
            pl.BlockSpec((1, tm, C), lambda b, i: (b, i, 0)),
            pl.BlockSpec((1, R, C), lambda b, i: (b, 0, 0)),
            pl.BlockSpec((1, 1, tm), lambda b, i: (b, 0, i)),
            pl.BlockSpec((1, K, ncls_dec), lambda b, i: (b, 0, 0)),
            pl.BlockSpec((1, 1), lambda b, i: (0, 0)),
        ],
        out_specs=(pl.BlockSpec((1, ncls, tm), lambda b, i: (b, 0, i)),
                   pl.BlockSpec((1, ncls_dec, tm), lambda b, i: (b, 0, i))),
        compiler_params=pltpu.CompilerParams(
            dimension_semantics=("parallel", "parallel")),
    )(x_p, p_stack, inv, wp_t, b_arr)
    return dist[:, :, :M], sig[:, :, :M]


def _kmeans_fused_kernel(pts_ref, w_ref, c0_ref, out_ref, *, iters):
    # All Lloyd iterations fused: points stay resident in VMEM, centers are the
    # fori_loop carry, bias and the counts division are computed in-kernel.
    def body(_, centers):
        pts = pts_ref[0]                                          # [M_pad, C] bf16
        w = w_ref[0]                                              # [1, M_pad] f32
        c_b = centers.astype(jnp.bfloat16)
        bias = -0.5 * jnp.sum(centers * centers, axis=-1, keepdims=True)   # [K, 1]
        s = jnp.einsum("kc,mc->km", c_b, pts,
                       preferred_element_type=jnp.float32) + bias          # [K, M]
        m = jnp.max(s, axis=0, keepdims=True)
        ids = jax.lax.broadcasted_iota(jnp.int32, s.shape, 0)
        idx = jnp.min(jnp.where(s >= m, ids, jnp.int32(10 ** 9)), axis=0, keepdims=True)
        onehot_w = jnp.where(ids == idx, w, 0.0)                  # [K, M] f32
        sums = jnp.dot(onehot_w.astype(jnp.bfloat16), pts,
                       preferred_element_type=jnp.float32)        # [K, C]
        cnt = jnp.sum(onehot_w, axis=1, keepdims=True)            # [K, 1]
        new = sums / jnp.maximum(cnt, 1e-6)
        return jnp.where(cnt > 0, new, centers)

    out_ref[0] = jax.lax.fori_loop(0, iters, body, c0_ref[0])


def _kmeans_step_kernel(pts_ref, w_ref, c_ref, bias_ref, sums_ref, cnt_ref,
                        acc_s, acc_c):
    # Streaming fallback: one E/M step, M-tiles accumulated in VMEM scratch and
    # written once on the last tile.
    i = pl.program_id(1)

    @pl.when(i == 0)
    def _():
        acc_s[...] = jnp.zeros_like(acc_s)
        acc_c[...] = jnp.zeros_like(acc_c)

    pts = pts_ref[0]                                              # [tm, C] bf16
    w = w_ref[0]                                                  # [1, tm] f32
    c = c_ref[0].astype(jnp.bfloat16)                             # [K, C]
    s = jnp.einsum("kc,mc->km", c, pts,
                   preferred_element_type=jnp.float32) + bias_ref[0]
    m = jnp.max(s, axis=0, keepdims=True)
    ids = jax.lax.broadcasted_iota(jnp.int32, s.shape, 0)
    idx = jnp.min(jnp.where(s >= m, ids, jnp.int32(10 ** 9)), axis=0, keepdims=True)
    onehot_w = jnp.where(ids == idx, w, 0.0)
    acc_s[...] += jnp.dot(onehot_w.astype(jnp.bfloat16), pts,
                          preferred_element_type=jnp.float32)
    acc_c[...] += jnp.sum(onehot_w, axis=1, keepdims=True)

    @pl.when(i == pl.num_programs(1) - 1)
    def _():
        sums_ref[0] = acc_s[...]
        cnt_ref[0] = acc_c[...]


def weighted_kmeans_batched(pts, wts, n_centers, iters=10,
                            max_resident_bytes=6 * (1 << 20)):
    """Weighted Lloyd kmeans, batched over the leading group axis.

    pts: [G, M, C], wts: [G, M] -> centers [G, K, C]
    TODO(synk): stands in for KmeansClustering(init='random'); deterministic
    top-weight init, and getFeaturesArray's variable-length point selection is
    approximated with 0/1 point weights so shapes stay static.
    """
    G, M, C = pts.shape
    Kc = n_centers

    order = jnp.argsort(-wts, axis=1)[:, :Kc]                             # [G, K]
    centers0 = pts.astype(jnp.float32)[jnp.arange(G)[:, None], order]     # [G, K, C]

    M_res = _round_up(M, 8)
    if M_res * C * 2 <= max_resident_bytes:
        # -------- resident points, all iterations fused in one launch --------
        pts_p = jnp.pad(pts.astype(jnp.bfloat16), ((0, 0), (0, M_res - M), (0, 0)))
        wts_p = jnp.pad(wts.astype(jnp.float32),
                        ((0, 0), (0, M_res - M))).reshape(G, 1, M_res)
        return pl.pallas_call(
            functools.partial(_kmeans_fused_kernel, iters=iters),
            out_shape=jax.ShapeDtypeStruct((G, Kc, C), jnp.float32),
            grid=(G,),
            in_specs=[
                pl.BlockSpec((1, M_res, C), lambda g: (g, 0, 0)),
                pl.BlockSpec((1, 1, M_res), lambda g: (g, 0, 0)),
                pl.BlockSpec((1, Kc, C), lambda g: (g, 0, 0)),
            ],
            out_specs=pl.BlockSpec((1, Kc, C), lambda g: (g, 0, 0)),
            compiler_params=pltpu.CompilerParams(
                dimension_semantics=("parallel",),
                vmem_limit_bytes=28 * (1 << 20)),   # sized for v7x's 64 MiB VMEM
        )(pts_p, wts_p, centers0)

    # -------- streaming fallback (points too big to keep resident) --------
    # TODO(synk): a fully fused-iteration streaming variant would need manual
    # DMA over M tiles inside the kernel; iterations stay outside here.
    tm, M_pad = _choose_m_tile(M, 1024)
    pts_p = jnp.pad(pts.astype(jnp.bfloat16), ((0, 0), (0, M_pad - M), (0, 0)))
    wts_p = jnp.pad(wts.astype(jnp.float32),
                    ((0, 0), (0, M_pad - M))).reshape(G, 1, M_pad)
    step = pl.pallas_call(
        _kmeans_step_kernel,
        out_shape=(jax.ShapeDtypeStruct((G, Kc, C), jnp.float32),
                   jax.ShapeDtypeStruct((G, Kc, 1), jnp.float32)),
        grid=(G, M_pad // tm),
        in_specs=[
            pl.BlockSpec((1, tm, C), lambda g, i: (g, i, 0)),
            pl.BlockSpec((1, 1, tm), lambda g, i: (g, 0, i)),
            pl.BlockSpec((1, Kc, C), lambda g, i: (g, 0, 0)),
            pl.BlockSpec((1, Kc, 1), lambda g, i: (g, 0, 0)),
        ],
        out_specs=(pl.BlockSpec((1, Kc, C), lambda g, i: (g, 0, 0)),
                   pl.BlockSpec((1, Kc, 1), lambda g, i: (g, 0, 0))),
        scratch_shapes=[pltpu.VMEM((Kc, C), jnp.float32),
                        pltpu.VMEM((Kc, 1), jnp.float32)],
        compiler_params=pltpu.CompilerParams(
            dimension_semantics=("parallel", "arbitrary"),
            vmem_limit_bytes=28 * (1 << 20)),
    )

    def body(_, centers):
        bias = -0.5 * jnp.sum(centers * centers, axis=-1, keepdims=True)
        sums, counts = step(pts_p, wts_p, centers, bias)
        new = sums / jnp.maximum(counts, 1e-6)
        return jnp.where(counts > 0, new, centers)

    return jax.lax.fori_loop(0, iters, body, centers0)


# ----------------------------------------------------------------------------
# JAX glue: resizes, adjoint-mask matrices, encoder, forward
# ----------------------------------------------------------------------------

def bilinear_matrix(n_in, n_out):
    """W such that bilinear-align_corners resize along one axis is y = W @ x."""
    if n_out == 1:
        ys = jnp.zeros((1,), jnp.float32)
    else:
        ys = jnp.linspace(0.0, float(n_in - 1), n_out)
    y0 = jnp.clip(jnp.floor(ys).astype(jnp.int32), 0, n_in - 1)
    y1 = jnp.clip(y0 + 1, 0, n_in - 1)
    wy = ys - y0.astype(jnp.float32)
    oh0 = jax.nn.one_hot(y0, n_in, dtype=jnp.float32) * (1.0 - wy)[:, None]
    oh1 = jax.nn.one_hot(y1, n_in, dtype=jnp.float32) * wy[:, None]
    return oh0 + oh1                                           # [n_out, n_in]


def resize_bilinear_ac(x, out_hw):
    """F.interpolate(mode='bilinear', align_corners=True) on [..., h, w]."""
    h, w = x.shape[-2], x.shape[-1]
    H, W = out_hw

    def coords(n_in, n_out):
        if n_out == 1:
            return jnp.zeros((1,), jnp.float32)
        return jnp.linspace(0.0, float(n_in - 1), n_out)

    ys, xs = coords(h, H), coords(w, W)
    y0 = jnp.clip(jnp.floor(ys).astype(jnp.int32), 0, h - 1)
    y1 = jnp.clip(y0 + 1, 0, h - 1)
    wy = ys - y0.astype(jnp.float32)
    x0 = jnp.clip(jnp.floor(xs).astype(jnp.int32), 0, w - 1)
    x1 = jnp.clip(x0 + 1, 0, w - 1)
    wx = xs - x0.astype(jnp.float32)

    top = jnp.take(x, y0, axis=-2)
    bot = jnp.take(x, y1, axis=-2)
    v = top * (1.0 - wy)[:, None] + bot * wy[:, None]
    left = jnp.take(v, x0, axis=-1)
    right = jnp.take(v, x1, axis=-1)
    return left * (1.0 - wx) + right * wx


def resize_nearest(x, out_hw):
    """F.interpolate(mode='nearest') on [..., h, w]."""
    h, w = x.shape[-2], x.shape[-1]
    H, W = out_hw
    yi = jnp.floor(jnp.arange(H) * (h / H)).astype(jnp.int32)
    xi = jnp.floor(jnp.arange(W) * (w / W)).astype(jnp.int32)
    return jnp.take(jnp.take(x, yi, axis=-2), xi, axis=-1)


def init_params(key, hdim=32, low_dim=16, patch=8):
    k1, k2, k3 = jax.random.split(key, 3)
    in_dim = 3 * patch * patch
    return {
        "patch": patch,
        "w_high": 0.05 * jax.random.normal(k1, (in_dim, hdim), jnp.float32),
        "b_high": jnp.zeros((hdim,), jnp.float32),
        "w_low": 0.05 * jax.random.normal(k2, (in_dim, low_dim), jnp.float32),
        "b_low": jnp.zeros((low_dim,), jnp.float32),
        "w_dec": 0.05 * jax.random.normal(k3, (hdim, 1), jnp.float32),
        "b_dec": jnp.zeros((1,), jnp.float32),
    }


def encode(params, imgs):
    """Encoder stand-in for get_low_and_high_features (ResNet50/101 dilated).

    TODO(synk): full ResNet backbone not reproduced; replaced by a deterministic
    strided patch-embedding matmul (high and low projections fused into ONE
    pallas matmul, N padded to 128 inside pallas_linear) producing high
    (layer4-like) and low (cat(layer2,layer3)-like) features at the same stride.
    imgs: [T, 3, H, W] -> (high [T, hdim, H/p, W/p], low [T, low_dim, H/p, W/p]).
    """
    p = params["patch"]
    T, C, H, W = imgs.shape
    hp, wp = H // p, W // p
    x = imgs.reshape(T, C, hp, p, wp, p).transpose(0, 2, 4, 1, 3, 5)
    x = x.reshape(T * hp * wp, C * p * p)
    w = jnp.concatenate([params["w_high"], params["w_low"]], axis=1)
    b = jnp.concatenate([params["b_high"], params["b_low"]], axis=0)
    y = pallas_linear(x, w, b, activation="relu")
    hdim = params["w_high"].shape[1]
    high = y[:, :hdim].reshape(T, hp, wp, hdim).transpose(0, 3, 1, 2)
    low = y[:, hdim:].reshape(T, hp, wp, -1).transpose(0, 3, 1, 2)
    return high, low


def few_shot_forward(params, supp_imgs, fore_mask, back_mask, qry_imgs, un_imgs, cfg):
    GLOBAL_CONST = 0.8
    n_ways, n_shots, n_queries = len(supp_imgs), len(supp_imgs[0]), len(qry_imgs)
    B = supp_imgs[0][0].shape[0]
    K = cfg["center"]

    imgs_concat = jnp.concatenate(
        [jnp.concatenate(way, 0) for way in supp_imgs]
        + [jnp.concatenate(qry_imgs, 0)], axis=0)
    img_fts, img_low_fts = encode(params, imgs_concat)
    qry_low_fts = img_low_fts[-n_queries * B:]

    if cfg.get("task", {}).get("n_unlabels", 1) == 0:
        un_cat = jnp.zeros_like(supp_imgs[0][0])
    else:
        un_cat = jnp.concatenate([jnp.concatenate(way, 0) for way in un_imgs], axis=0)
    un_fts = jax.lax.stop_gradient(encode(params, un_cat)[0])   # torch.no_grad()

    hc, fh, fw = img_fts.shape[1], img_fts.shape[2], img_fts.shape[3]
    lowc = img_low_fts.shape[1]
    supp_fts = img_fts[: n_ways * n_shots * B].reshape(n_ways, n_shots, B, hc, fh, fw)
    supp_low_fts = img_low_fts[: n_ways * n_shots * B].reshape(n_ways, n_shots, B, lowc, fh, fw)
    qry_fts = img_fts[n_ways * n_shots * B:].reshape(n_queries, B, hc, fh, fw)

    fore_mask = jnp.stack([jnp.stack(way, 0) for way in fore_mask], 0).astype(jnp.float32)
    back_mask = jnp.stack([jnp.stack(way, 0) for way in back_mask], 0).astype(jnp.float32)
    Hm, Wm = fore_mask.shape[-2], fore_mask.shape[-1]

    # ------------- masked average pooling via adjoint of bilinear resize -------------
    # sum_{YX} m * Interp(f) == sum_{yx} f * (Wy^T m Wx): pool at feature resolution.
    G = n_ways * n_shots * B
    s_high = supp_fts.reshape(G, hc, fh, fw)
    s_low = supp_low_fts.reshape(G, lowc, fh, fw)
    fmask = fore_mask.reshape(G, Hm, Wm)
    bmask = back_mask.reshape(G, Hm, Wm)

    Wy = bilinear_matrix(fh, Hm)                                   # [Hm, fh]
    Wx = bilinear_matrix(fw, Wm)                                   # [Wm, fw]
    both_masks = jnp.stack([fmask, bmask], axis=1)                 # [G, 2, Hm, Wm]
    masks_adj = jnp.einsum("Yy,gnYX,Xx->gnyx", Wy, both_masks, Wx) # [G, 2, fh, fw]
    masks_adj = masks_adj.reshape(G, 2, fh * fw)
    den = both_masks.sum(axis=(-2, -1)) + 1e-5                     # [G, 2]

    feats_cat = jnp.concatenate([s_high, s_low], axis=1)           # [G, hc+lowc, fh, fw]
    feats_rows = feats_cat.transpose(0, 2, 3, 1).reshape(G, fh * fw, hc + lowc)
    pooled = masked_pool_batched(feats_rows, masks_adj) / den[..., None]   # [G,2,hc+lowc]

    pools_high = pooled[:, :, :hc].reshape(n_ways, n_shots, B, 2, hc)
    pools_low_fg = pooled[:, 0, hc:].reshape(n_ways, n_shots, B, lowc)

    fg_glo = pools_high[..., 0, :].mean(axis=1)                    # [n_ways, B, hc]
    bg_glo = pools_high[..., 1, :].mean(axis=(0, 1))               # [B, hc]
    s_low_protos_arr = pools_low_fg[0].mean(axis=0)                # way 0 -> [B, lowc]
    s_low_protos = [s_low_protos_arr[epi:epi + 1] for epi in range(B)]

    # ---------------- point sets for kmeans (getFeaturesArray, weighted) ----------
    # TODO(synk): getFeaturesArray's data-dependent fallbacks (mask sum <= 10 /
    # empty mask give variable-length point sets); approximated with weighted
    # points so shapes stay static.
    ph, pw = fh * 2, fw * 2
    fg_pts_up = resize_bilinear_ac(s_high, (ph, pw))               # upscale=2
    fg_w_up = resize_nearest(fmask, (ph, pw))
    fg_pts = fg_pts_up.transpose(0, 2, 3, 1).reshape(n_ways, n_shots, B, ph * pw, hc)
    fg_wts = fg_w_up.reshape(n_ways, n_shots, B, ph * pw)
    bg_pts = s_high.transpose(0, 2, 3, 1).reshape(n_ways, n_shots, B, fh * fw, hc)
    bg_wts = resize_nearest(bmask, (fh, fw)).reshape(n_ways, n_shots, B, fh * fw)

    # kmeansPrototype: fg per (way, epi) over shots; bg per epi over ways x shots.
    fg_pts_k = fg_pts.transpose(0, 2, 1, 3, 4).reshape(n_ways * B, n_shots * ph * pw, hc)
    fg_wts_k = fg_wts.transpose(0, 2, 1, 3).reshape(n_ways * B, n_shots * ph * pw)
    fg_centers = weighted_kmeans_batched(fg_pts_k, fg_wts_k, K).reshape(n_ways, B, K, hc)

    bg_pts_k = bg_pts.transpose(2, 0, 1, 3, 4).reshape(B, n_ways * n_shots * fh * fw, hc)
    bg_wts_k = bg_wts.transpose(2, 0, 1, 3).reshape(B, n_ways * n_shots * fh * fw)
    bg_centers = weighted_kmeans_batched(bg_pts_k, bg_wts_k, K)        # [B, K, hc]

    fg_protos = fg_centers + GLOBAL_CONST * fg_glo[:, :, None, :]      # [n_ways, B, K, hc]
    bg_proto = bg_centers + GLOBAL_CONST * bg_glo[:, None, :]          # [B, K, hc]
    protos_all = jnp.concatenate([bg_proto[None], fg_protos], axis=0)
    protos_all = protos_all.transpose(1, 0, 2, 3)                      # [B, ncls, K, hc]
    ncls = 1 + n_ways

    # ---------- fused calDist (cosine + argmax) + prototype select + decoder ----------
    Mq = n_queries * fh * fw
    q_rows = qry_fts.transpose(1, 0, 3, 4, 2).reshape(B, Mq, hc)
    dist, sig = cosine_decoder_batched(q_rows, protos_all, params["w_dec"],
                                       params["b_dec"], ncls_dec=2, scaler=20.0,
                                       sigma_min=0.1, sigma_scale=1.0)
    dist = dist.reshape(B, ncls, n_queries, fh, fw)
    pred = dist.transpose(0, 2, 1, 3, 4).reshape(B * n_queries, ncls, fh, fw)
    output_sm = jax.nn.softmax(pred, axis=1)            # 2-wide softmax -> plain JAX
    sigmas = sig.reshape(B, 2, n_queries, fh, fw)
    sigmas = sigmas.transpose(0, 2, 1, 3, 4).reshape(B * n_queries, 2, fh, fw)

    return {
        "prototypes": [[protos_all[epi, c] for c in range(ncls)] for epi in range(B)],
        "mean": output_sm,
        "sigma": sigmas,
        "qft_high": qry_fts,
        "qft_low": qry_low_fts,
        "un_fts": un_fts,
        "s_low_protos": s_low_protos,
    }


# ----------------------------------------------------------------------------
# Demo
# ----------------------------------------------------------------------------
if __name__ == "__main__":
    key = jax.random.PRNGKey(0)
    cfg = {"center": 4, "task": {"n_unlabels": 1}}
    n_ways, n_shots, n_queries, B = 1, 1, 1, 2
    H = W = 32

    params = init_params(key, hdim=32, low_dim=16, patch=8)
    ks = jax.random.split(key, 8)
    supp_imgs = [[jax.random.normal(ks[0], (B, 3, H, W), jnp.float32)]]
    qry_imgs = [jax.random.normal(ks[1], (B, 3, H, W), jnp.float32)]
    un_imgs = [[jax.random.normal(ks[2], (B, 3, H, W), jnp.float32)]]
    fm = (jax.random.uniform(ks[3], (B, H, W)) > 0.5).astype(jnp.float32)
    fore_mask = [[fm]]
    back_mask = [[1.0 - fm]]

    out = few_shot_forward(params, supp_imgs, fore_mask, back_mask, qry_imgs, un_imgs, cfg)
    jax.block_until_ready(out["mean"])
    jax.block_until_ready(out["sigma"])
    jax.block_until_ready(out["un_fts"])

    assert out["mean"].shape == (B * n_queries, 1 + n_ways, H // 8, W // 8)
    assert out["sigma"].shape == (B * n_queries, 2, H // 8, W // 8)
    print("KERNEL_OK")
</pallas_src>

<mosaic_0001>
module attributes {stable_mosaic.version = 11 : i64} {
  func.func @_linear_kernel(%arg0: i32, %arg1: memref<64x192xbf16, #tpu.memory_space<vmem>>, %arg2: memref<192x128xbf16, #tpu.memory_space<vmem>>, %arg3: memref<1x128xf32, #tpu.memory_space<vmem>>, %arg4: memref<64x128xf32, #tpu.memory_space<vmem>>) attributes {dimension_semantics = [#tpu.dimension_semantics<parallel>], iteration_bounds = array<i64: 1>, scalar_prefetch = 0 : i64, scratch_operands = 0 : i64, tpu.core_type = #tpu.core_type<tc>, window_params = [{transform_indices = @transform_0, window_bounds = array<i64: 64, 192>}, {pipeline_mode = #tpu.pipeline_mode<synchronous>, transform_indices = @transform_1, window_bounds = array<i64: 192, 128>}, {pipeline_mode = #tpu.pipeline_mode<synchronous>, transform_indices = @transform_2, window_bounds = array<i64: 1, 128>}, {transform_indices = @transform_3, window_bounds = array<i64: 64, 128>}]} {
    %c0 = arith.constant 0 : index
    %c0_0 = arith.constant 0 : index
    %0 = vector.load %arg1[%c0, %c0_0] : memref<64x192xbf16, #tpu.memory_space<vmem>>, vector<64x192xbf16>
    %c0_1 = arith.constant 0 : index
    %c0_2 = arith.constant 0 : index
    %1 = vector.load %arg2[%c0_1, %c0_2] : memref<192x128xbf16, #tpu.memory_space<vmem>>, vector<192x128xbf16>
    %cst = arith.constant dense<0.000000e+00> : vector<64x128xf32>
    %2 = tpu.matmul %0, %1, %cst {dimension_numbers = #tpu.dot_dimension_numbers<[1], [0], [0], [1], [0, 0, 1, 1], [], []>} : vector<64x192xbf16>, vector<192x128xbf16>, vector<64x128xf32> -> vector<64x128xf32>
    %c0_3 = arith.constant 0 : index
    %c0_4 = arith.constant 0 : index
    %3 = vector.load %arg3[%c0_3, %c0_4] : memref<1x128xf32, #tpu.memory_space<vmem>>, vector<1x128xf32>
    %4 = vector.broadcast %3 : vector<1x128xf32> to vector<64x128xf32>
    %5 = arith.addf %2, %4 : vector<64x128xf32>
    %cst_5 = arith.constant 0.000000e+00 : f32
    %6 = vector.broadcast %cst_5 : f32 to vector<64x128xf32>
    %7 = arith.maximumf %5, %6 : vector<64x128xf32>
    %c0_6 = arith.constant 0 : index
    %c0_7 = arith.constant 0 : index
    %8 = vector.load %arg4[%c0_6, %c0_7] : memref<64x128xf32, #tpu.memory_space<vmem>>, vector<64x128xf32>
    tpu.vector_store %arg4[%c0_6, %c0_7], %7 {strides = array<i32>} : memref<64x128xf32, #tpu.memory_space<vmem>>, vector<64x128xf32>,
    return
  }
  func.func @transform_0(%arg0: i32) -> (i32, i32) {
    %c0_i32 = arith.constant 0 : i32
    %c0_i32_0 = arith.constant 0 : i32
    return %arg0, %c0_i32 : i32, i32
  }
  func.func @transform_1(%arg0: i32) -> (i32, i32) {
    %c0_i32 = arith.constant 0 : i32
    %c0_i32_0 = arith.constant 0 : i32
    %c0_i32_1 = arith.constant 0 : i32
    return %c0_i32, %c0_i32_0 : i32, i32
  }
  func.func @transform_2(%arg0: i32) -> (i32, i32) {
    %c0_i32 = arith.constant 0 : i32
    %c0_i32_0 = arith.constant 0 : i32
    %c0_i32_1 = arith.constant 0 : i32
    return %c0_i32, %c0_i32_0 : i32, i32
  }
  func.func @transform_3(%arg0: i32) -> (i32, i32) {
    %c0_i32 = arith.constant 0 : i32
    %c0_i32_0 = arith.constant 0 : i32
    return %arg0, %c0_i32 : i32, i32
  }
}

</mosaic_0001>

<bundles_post_ra>
// kernel: tpu_custom_call.1
= control target key start
LH: loop header
LB: loop body
LE: loop exit
PB: predicated region body
PF: predicated region fallthrough
CT: control target
= control target key end

     0   :  { %8 = vsyncpa [#allocation3], 0  ;;  %s533_s0 = inlined_call_operand.hbm [shape: bf16[64,192], index: 0, kind: input, shape index: {}]   ;;  %s534_s1 = inlined_call_operand.hbm [shape: bf16[192,128], index: 1, kind: input, shape index: {}]   ;;  %s535_s2 = inlined_call_operand.vmem [shape: f32[1,128], index: 2, kind: input, shape index: {}]   ;;  %s536_s3 = inlined_call_operand.hbm [shape: f32[64,128], index: 3, kind: output, shape index: {}]  }
   0x1   :  { %9 = vsyncpa [#allocation6], 0 }
   0x2   :  { %10 = vsyncpa [#allocation4], 0  ;;  %s456_s12 = smov [#allocation2]   ;;  %s384_s16 = scalar_lea.hbm %s533_s0, 1024 }
   0x3   :  { %s16_s13 = sshll.u32 %s456_s12, 4  ;;  %p385_p0 = scmp.ne.s32.totalorder %s533_s0, %s384_s16  ;;  %s17_s13 = int_to_ptr.vmem [resolvable:$true] %s16_s13 }
   0x4   :  { %p388_p1 = scmp.lt.u32.totalorder %s384_s16, %s533_s0 }
   0x6   :  { %p390_p2 = pnand %p388_p1, %p385_p0 }
   0x8   :  { %393 = shalt.err (!%p390_p2)
}
   0x9   :  { %s394_s21 = scalar_lea.vmem %s17_s13, 1024  ;;  %p399_p4 = scmp.lt.s32.totalorder %s17_s13, %s17_s13 }
   0xa   :  { %p395_p3 = scmp.ne.s32.totalorder %s17_s13, %s394_s21  ;;  %p400_p5 = scmp.lt.s32.totalorder %s394_s21, %s394_s21 }
   0xc   :  { %p401_p6 = por %p400_p5, %p399_p4 }
   0xe   :  { %p402_p7 = pnand %p401_p6, %p395_p3 }
  0x10   :  { %405 = shalt.err (!%p402_p7)
}
  0x11   :  { %s457_s22 = smov 128   ;;  %s458_s23 = smov 8  }
  0x12   :  { %22 = dma.hbm_to_vmem [thread:$0]  %s533_s0, 1024, %s17_s13, [#allocation3], %s457_s22, %s457_s22, %s458_s23  }
  0x13   :  { %s459_s26 = smov [#allocation5]   ;;  %s406_s30 = scalar_lea.hbm %s534_s1, 1536 }
  0x14   :  { %s28_s27 = sshll.u32 %s459_s26, 4  ;;  %p407_p8 = scmp.ne.s32.totalorder %s534_s1, %s406_s30  ;;  %s29_s27 = int_to_ptr.vmem [resolvable:$true] %s28_s27 }
  0x15   :  { %p410_p9 = scmp.lt.u32.totalorder %s406_s30, %s534_s1 }
  0x17   :  { %p412_p10 = pnand %p410_p9, %p407_p8 }
  0x19   :  { %415 = shalt.err (!%p412_p10)
}
  0x1a   :  { %s416_s8 = scalar_lea.vmem %s29_s27, 1536  ;;  %p421_p12 = scmp.lt.s32.totalorder %s29_s27, %s29_s27 }
  0x1b   :  { %p417_p11 = scmp.ne.s32.totalorder %s29_s27, %s416_s8  ;;  %p422_p13 = scmp.lt.s32.totalorder %s416_s8, %s416_s8 }
  0x1d   :  { %p423_p0 = por %p422_p13, %p421_p12 }
  0x1f   :  { %p424_p1 = pnand %p423_p0, %p417_p11 }
  0x21   :  { %427 = shalt.err (!%p424_p1)
}
  0x22   :  { %s460_s0 = smov 64   ;;  %s461_s9 = smov 4  }
  0x23   :  { %34 = dma.hbm_to_vmem [thread:$0]  %s534_s1, 1536, %s29_s27, [#allocation6], %s460_s0, %s460_s0, %s461_s9  }
  0x24   :  { %450 = dma.done.wait [#allocation3], 1024  }
  0x25   :  { %451 = vsyncadd [#allocation3], 4294966272 }
  0x26   :  { %452 = dma.done.wait [#allocation6], 1536  }
  0x27   :  { %453 = vsyncadd [#allocation6], 4294965760  ;;  %v462_v0 = vmov 0   ;;  %v360_v1 = vld [vmem:[#allocation5] sm:$0xff]   ;;  %v361_v2 = vld [vmem:[#allocation5 + $0x8] sm:$0xff]   ;;  %vm191_vm0 = vcmask 523264  }
  0x28   :  { %204 = vmatprep.subr.bf16.mxu0 %v462_v0  ;;  %328 = vmatprep.subr.bf16.mxu1 %v462_v0  ;;  %v362_v3 = vld [vmem:[#allocation5 + $0x10] sm:$0xff]   ;;  %v363_v4 = vld [vmem:[#allocation5 + $0x18] sm:$0xff]   ;;  %v374_v5 = vld [vmem:[#allocation2 + $0x4] ss:$8 sps:$4 sm:$0xff]  }
  0x29   :  { %205 = vmatpush1.bf16.msra.mxu0 %v360_v1  ;;  %340 = vmatpush1.bf16.msra.mxu1 %v360_v1  ;;  %v364_v6 = vld [vmem:[#allocation5 + $0x20] sm:$0xff]   ;;  %v365_v8 = vld [vmem:[#allocation5 + $0x28] sm:$0xff]   ;;  %v366_v9 = vld [vmem:[#allocation5 + $0x30] sm:$0xff]  }
  0x2a   :  { %206 = vmatprep.subr.bf16.mxu0 %v462_v0  ;;  %329 = vmatprep.subr.bf16.mxu1 %v462_v0  ;;  %v377_v7 = vld [vmem:[#allocation2 + $0x24] ss:$8 sps:$4 sm:$0xff]   ;;  %v367_v10 = vld [vmem:[#allocation5 + $0x38] sm:$0xff]   ;;  %v370_v13 = vld [vmem:[#allocation5 + $0x50] sm:$0xff]  }
  0x2b   :  { %324 = vmatprep.mubr.msk.bf16.mxu0 %vm191_vm0, %v374_v5  ;;  %326 = vmatprep.mubr.msk.bf16.mxu1 %vm191_vm0, %v377_v7  ;;  %v368_v11 = vld [vmem:[#allocation5 + $0x40] sm:$0xff]   ;;  %v369_v12 = vld [vmem:[#allocation5 + $0x48] sm:$0xff]   ;;  %v371_v14 = vld [vmem:[#allocation5 + $0x58] sm:$0xff]  }
  0x2c   :  { %v372_v15 = vld [vmem:[#allocation2] ss:$8 sps:$4 sm:$0xff]   ;;  %v378_v17 = vld [vmem:[#allocation2 + $0x14] ss:$8 sps:$4 sm:$0xff]   ;;  %v382_v19 = vld [vmem:[#allocation2 + $0x10] ss:$8 sps:$4 sm:$0xff]  }
  0x2d   :  { %207 = vmatpush1.bf16.msra.mxu0 %v361_v2  ;;  %341 = vmatpush1.bf16.msra.mxu1 %v361_v2  ;;  %v375_v16 = vld [vmem:[#allocation2 + $0x20] ss:$8 sps:$4 sm:$0xff]   ;;  %v380_v18 = vld [vmem:[#allocation2 + $0x34] ss:$8 sps:$4 sm:$0xff]   ;;  %v383_v20 = vld [vmem:[#allocation2 + $0x30] ss:$8 sps:$4 sm:$0xff]  }
  0x2e   :  { %208 = vmatprep.subr.bf16.mxu0 %v462_v0  ;;  %330 = vmatprep.subr.bf16.mxu1 %v462_v0  ;;  %v303_v21 = vld [vmem:[%s535_s2] ss:$0 sm:$0xff]  ;;  %s463_s2 = smov [#allocation7]  }
  0x2f   :  { %s290_s13 = sshll.u32 %s463_s2, 4  ;;  %s291_s13 = int_to_ptr.vmem [resolvable:$true] %s290_s13 }
  0x30   :  { %s428_s14 = scalar_lea.vmem %s291_s13, 1024  ;;  %p433_p3 = scmp.lt.s32.totalorder %s291_s13, %s291_s13 }
  0x31   :  { %209 = vmatpush1.bf16.msra.mxu0 %v362_v3  ;;  %342 = vmatpush1.bf16.msra.mxu1 %v362_v3  ;;  %p429_p2 = scmp.ne.s32.totalorder %s291_s13, %s428_s14  ;;  %p434_p4 = scmp.lt.s32.totalorder %s428_s14, %s428_s14 }
  0x32   :  { %210 = vmatprep.subr.bf16.mxu0 %v462_v0  ;;  %331 = vmatprep.subr.bf16.mxu1 %v462_v0 }
  0x33   :  { %p435_p5 = por %p434_p4, %p433_p3 }
  0x35   :  { %211 = vmatpush1.bf16.msra.mxu0 %v363_v4  ;;  %343 = vmatpush1.bf16.msra.mxu1 %v363_v4  ;;  %p436_p6 = pnand %p435_p5, %p429_p2 }
  0x36   :  { %212 = vmatprep.subr.bf16.mxu0 %v462_v0  ;;  %332 = vmatprep.subr.bf16.mxu1 %v462_v0 }
  0x39   :  { %213 = vmatpush1.bf16.msra.mxu0 %v364_v6  ;;  %344 = vmatpush1.bf16.msra.mxu1 %v364_v6 }
  0x3a   :  { %214 = vmatprep.subr.bf16.mxu0 %v462_v0  ;;  %333 = vmatprep.subr.bf16.mxu1 %v462_v0 }
  0x3d   :  { %215 = vmatpush1.bf16.msra.mxu0 %v365_v8  ;;  %345 = vmatpush1.bf16.msra.mxu1 %v365_v8 }
  0x3e   :  { %216 = vmatprep.subr.bf16.mxu0 %v462_v0  ;;  %334 = vmatprep.subr.bf16.mxu1 %v462_v0 }
  0x41   :  { %217 = vmatpush1.bf16.msra.mxu0 %v366_v9  ;;  %346 = vmatpush1.bf16.msra.mxu1 %v366_v9 }
  0x42   :  { %218 = vmatprep.subr.bf16.mxu0 %v462_v0  ;;  %335 = vmatprep.subr.bf16.mxu1 %v462_v0 }
  0x45   :  { %219 = vmatpush1.bf16.msra.mxu0 %v367_v10  ;;  %347 = vmatpush1.bf16.msra.mxu1 %v367_v10 }
  0x46   :  { %220 = vmatprep.subr.bf16.mxu0 %v462_v0  ;;  %336 = vmatprep.subr.bf16.mxu1 %v462_v0 }
  0x49   :  { %221 = vmatpush1.bf16.msra.mxu0 %v368_v11  ;;  %348 = vmatpush1.bf16.msra.mxu1 %v368_v11 }
  0x4a   :  { %222 = vmatprep.subr.bf16.mxu0 %v462_v0  ;;  %337 = vmatprep.subr.bf16.mxu1 %v462_v0 }
  0x4d   :  { %223 = vmatpush1.bf16.msra.mxu0 %v369_v12  ;;  %349 = vmatpush1.bf16.msra.mxu1 %v369_v12 }
  0x4e   :  { %224 = vmatprep.subr.bf16.mxu0 %v462_v0  ;;  %338 = vmatprep.subr.bf16.mxu1 %v462_v0 }
  0x51   :  { %225 = vmatpush1.bf16.msra.mxu0 %v370_v13  ;;  %350 = vmatpush1.bf16.msra.mxu1 %v370_v13 }
  0x52   :  { %226 = vmatprep.subr.bf16.mxu0 %v462_v0  ;;  %339 = vmatprep.subr.bf16.mxu1 %v462_v0 }
  0x55   :  { %227 = vmatpush1.bf16.msra.mxu0 %v371_v14  ;;  %351 = vmatpush1.bf16.msra.mxu1 %v371_v14 }
  0x58   :  { %237 = vmatmul.mubr.bf16.vlgmr.msra.gmra.mrb[0].mxu0 %v372_v15  ;;  %253 = vmatmul.mubr.bf16.vlgmr.msra.gmra.mrb[0].mxu1 %v375_v16 }
  0x59   :  { %325 = vmatprep.mubr.msk.bf16.mxu0 %vm191_vm0, %v378_v17  ;;  %327 = vmatprep.mubr.msk.bf16.mxu1 %vm191_vm0, %v380_v18 }
  0x60   :  { %245 = vmatmul.mubr.bf16.gmra.mrb[4].mxu0 %v382_v19  ;;  %261 = vmatmul.mubr.bf16.gmra.mrb[4].mxu1 %v383_v20 }
 0x12b   :  { %v238_v22 = vpop.f32.mrb[0].mxu0  ;;  %v254_v23 = vpop.f32.mrb[0].mxu1 }
 0x12c   :  { %v239_v24 = vadd.f32 %v303_v21, %v238_v22  ;;  %v255_v25 = vadd.f32 %v303_v21, %v254_v23  ;;  %v240_v26 = vpop.f32.mrb[1].mxu0  ;;  %v256_v27 = vpop.f32.mrb[1].mxu1 }
 0x12d   :  { %v241_v28 = vpop.f32.mrb[2].mxu0  ;;  %v257_v29 = vpop.f32.mrb[2].mxu1 }
 0x12e   :  { %v269_v30 = vmax.f32 %v239_v24, 0.0  ;;  %v273_v31 = vmax.f32 %v255_v25, 0.0  ;;  %v242_v32 = vadd.f32 %v303_v21, %v241_v28  ;;  %v258_v33 = vadd.f32 %v303_v21, %v257_v29  ;;  %v243_v34 = vpop.f32.mrb[3].mxu0  ;;  %v259_v35 = vpop.f32.mrb[3].mxu1 }
 0x130   :  { %277 = vst [vmem:[#allocation7] sm:$0xff] %v269_v30  ;;  %281 = vst [vmem:[#allocation7 + $0x20] sm:$0xff] %v273_v31  ;;  %v270_v36 = vmax.f32 %v242_v32, 0.0  ;;  %v274_v37 = vmax.f32 %v258_v33, 0.0 }
 0x132   :  { %278 = vst [vmem:[#allocation7 + $0x8] sm:$0xff] %v270_v36  ;;  %282 = vst [vmem:[#allocation7 + $0x28] sm:$0xff] %v274_v37 }
 0x133   :  { %v246_v38 = vpop.f32.mrb[4].mxu0  ;;  %v262_v39 = vpop.f32.mrb[4].mxu1 }
 0x134   :  { %v247_v40 = vadd.f32 %v303_v21, %v246_v38  ;;  %v263_v41 = vadd.f32 %v303_v21, %v262_v39  ;;  %v248_v42 = vpop.f32.mrb[5].mxu0  ;;  %v264_v43 = vpop.f32.mrb[5].mxu1 }
 0x135   :  { %v249_v44 = vpop.f32.mrb[6].mxu0  ;;  %v265_v45 = vpop.f32.mrb[6].mxu1 }
 0x136   :  { %v271_v46 = vmax.f32 %v247_v40, 0.0  ;;  %v275_v47 = vmax.f32 %v263_v41, 0.0  ;;  %v250_v48 = vadd.f32 %v303_v21, %v249_v44  ;;  %v266_v49 = vadd.f32 %v303_v21, %v265_v45  ;;  %v251_v50 = vpop.f32.mrb[7].mxu0  ;;  %v267_v51 = vpop.f32.mrb[7].mxu1 }
 0x138   :  { %279 = vst [vmem:[#allocation7 + $0x10] sm:$0xff] %v271_v46  ;;  %283 = vst [vmem:[#allocation7 + $0x30] sm:$0xff] %v275_v47  ;;  %v272_v52 = vmax.f32 %v250_v48, 0.0  ;;  %v276_v53 = vmax.f32 %v266_v49, 0.0 }
 0x13a   :  { %280 = vst [vmem:[#allocation7 + $0x18] sm:$0xff] %v272_v52  ;;  %284 = vst [vmem:[#allocation7 + $0x38] sm:$0xff] %v276_v53 }
 0x13b   :  { %439 = shalt.err (!%p436_p6)
}
 0x13c   :  { %s440_s17 = scalar_lea.hbm %s536_s3, 1024 }
 0x13d   :  { %p441_p7 = scmp.ne.s32.totalorder %s536_s3, %s440_s17  ;;  %p444_p8 = scmp.lt.u32.totalorder %s440_s17, %s536_s3 }
 0x13f   :  { %p446_p9 = pnand %p444_p8, %p441_p7 }
 0x141   :  { %449 = shalt.err (!%p446_p9)
}
 0x142   :  { %296 = dma.vmem_to_hbm [thread:$0]  %s291_s13, 1024, %s536_s3, [#allocation4], %s457_s22, %s457_s22, %s458_s23  }
 0x143   :  { %454 = dma.done.wait [#allocation4], 1024  }
 0x144   :  { %455 = vsyncadd [#allocation4], 4294966272 }
 0x145   :  { %300 = vsyncpa [#allocation3], 1 }
 0x146   :  { %301 = vsyncpa [#allocation6], 1 }
 0x147   :  { %302 = vsyncpa [#allocation4], 1 }

</bundles_post_ra>
